<compile_context>
chip_gen: v5e
topology: v5e:2x2
jax: 0.10.0
libtpu: 0.0.40
codegen_flags: <defaults>
</compile_context>

<pallas_src>
import functools

import jax
import jax.numpy as jnp
from jax.experimental import pallas as pl
from jax.experimental.pallas import tpu as pltpu

STATE_DIM = 11   # Hopper-v5 observation dim
ACTION_DIM = 3   # Hopper-v5 action dim
HIDDEN = 256


def _round_up(x, m):
    return (x + m - 1) // m * m


def _choose_tiling(batch, block_b):
    """Pick (tile_rows, padded_batch) minimizing padded rows."""
    n_steps = max(1, -(-batch // block_b))          # ceil-div
    tb = _round_up(max(-(-batch // n_steps), 1), 8)  # rows/step, 8-aligned
    return tb, tb * n_steps


def critic_kernel(s_ref, a_ref,
                  w14s_ref, w14a_ref, b14_ref,
                  w2_ref, b2_ref, w5_ref, b5_ref,
                  w3_ref, b3_ref, w6_ref, b6_ref,
                  q1_ref, q2_ref):
    # Cast to bf16 only at the MXU inputs; keep bias/ReLU math in f32.
    s = s_ref[...].astype(jnp.bfloat16)
    a = a_ref[...].astype(jnp.bfloat16)

    # Fused first layer of BOTH heads: one (TB, 512) result slab.
    h = (jnp.dot(s, w14s_ref[...], preferred_element_type=jnp.float32)
         + jnp.dot(a, w14a_ref[...], preferred_element_type=jnp.float32)
         + b14_ref[...])
    h = jnp.maximum(h, 0.0)
    # Lane slice at a 128-aligned boundary (256): no cross-tile copy.
    h1 = h[:, :HIDDEN].astype(jnp.bfloat16)   # Q1 head activations
    h2 = h[:, HIDDEN:].astype(jnp.bfloat16)   # Q2 head activations

    g1 = jnp.dot(h1, w2_ref[...], preferred_element_type=jnp.float32) + b2_ref[...]
    g1 = jnp.maximum(g1, 0.0)
    g2 = jnp.dot(h2, w5_ref[...], preferred_element_type=jnp.float32) + b5_ref[...]
    g2 = jnp.maximum(g2, 0.0)

    # 256 -> 1 projections on VPU (multiply) + XLU (lane reduce): avoids a
    # 1-lane MXU output.
    q1 = jnp.sum(g1 * w3_ref[...], axis=-1, keepdims=True) + b3_ref[...]
    q2 = jnp.sum(g2 * w6_ref[...], axis=-1, keepdims=True) + b6_ref[...]
    q1_ref[...] = q1.astype(q1_ref.dtype)
    q2_ref[...] = q2.astype(q2_ref.dtype)


def prepare_params(params):
    """One-time repack of PyTorch-layout params into the kernel's layout."""
    bf16 = jnp.bfloat16
    # Fuse the first layers of both heads along the output (lane) axis.
    w14 = jnp.concatenate([params["w1"], params["w4"]], axis=1).astype(bf16)
    return {
        "w14s": w14[:STATE_DIM],                                   # (11, 512) bf16
        "w14a": w14[STATE_DIM:],                                   # (3, 512)  bf16
        "b14": jnp.concatenate([params["b1"], params["b4"]], axis=1)
               .astype(jnp.float32),                               # (1, 512)
        "w2": params["w2"].astype(bf16),                           # (256, 256) bf16
        "b2": params["b2"].astype(jnp.float32),                    # (1, 256)
        "w5": params["w5"].astype(bf16),
        "b5": params["b5"].astype(jnp.float32),
        # Final 256->1 weights as lane-rows for the VPU reduce (kept f32).
        "w3": params["w3"].reshape(1, HIDDEN).astype(jnp.float32),  # (1, 256)
        "b3": params["b3"].astype(jnp.float32),                     # (1, 1)
        "w6": params["w6"].reshape(1, HIDDEN).astype(jnp.float32),
        "b6": params["b6"].astype(jnp.float32),
    }


@functools.partial(jax.jit, static_argnames=("block_b",))
def critic_forward(state, action, prepped, *, block_b=512):
    B = state.shape[0]
    tb, pb = _choose_tiling(B, block_b)
    if pb != B:
        state = jnp.pad(state, ((0, pb - B), (0, 0)))
        action = jnp.pad(action, ((0, pb - B), (0, 0)))
    grid = (pb // tb,)

    act_map = lambda i: (i, 0)   # batch-tiled activations / outputs
    rep_map = lambda i: (0, 0)   # weights stay resident across grid steps

    in_specs = [
        pl.BlockSpec((tb, STATE_DIM), act_map),
        pl.BlockSpec((tb, ACTION_DIM), act_map),
        pl.BlockSpec((STATE_DIM, 2 * HIDDEN), rep_map),
        pl.BlockSpec((ACTION_DIM, 2 * HIDDEN), rep_map),
        pl.BlockSpec((1, 2 * HIDDEN), rep_map),
        pl.BlockSpec((HIDDEN, HIDDEN), rep_map),
        pl.BlockSpec((1, HIDDEN), rep_map),
        pl.BlockSpec((HIDDEN, HIDDEN), rep_map),
        pl.BlockSpec((1, HIDDEN), rep_map),
        pl.BlockSpec((1, HIDDEN), rep_map),
        pl.BlockSpec((1, 1), rep_map),
        pl.BlockSpec((1, HIDDEN), rep_map),
        pl.BlockSpec((1, 1), rep_map),
    ]
    out_specs = (pl.BlockSpec((tb, 1), act_map),
                 pl.BlockSpec((tb, 1), act_map))

    # Advisory cost for XLA scheduling of surrounding training-step ops.
    flops = 2 * pb * ((STATE_DIM + ACTION_DIM) * 2 * HIDDEN
                      + 2 * HIDDEN * HIDDEN + 2 * HIDDEN)
    weight_bytes = (2 * ((STATE_DIM + ACTION_DIM) * 2 * HIDDEN + 2 * HIDDEN * HIDDEN)
                    + 4 * (2 * HIDDEN + 2 * HIDDEN + 2 * HIDDEN + 2))
    act_bytes = 4 * pb * (STATE_DIM + ACTION_DIM + 2)
    cost = pl.CostEstimate(flops=flops, transcendentals=0,
                           bytes_accessed=weight_bytes + act_bytes)

    q1, q2 = pl.pallas_call(
        critic_kernel,
        out_shape=(jax.ShapeDtypeStruct((pb, 1), jnp.float32),
                   jax.ShapeDtypeStruct((pb, 1), jnp.float32)),
        grid=grid,
        in_specs=in_specs,
        out_specs=out_specs,
        compiler_params=pltpu.CompilerParams(
            dimension_semantics=("parallel",)),   # megacore split on v7x
        cost_estimate=cost,
    )(state, action,
      prepped["w14s"], prepped["w14a"], prepped["b14"],
      prepped["w2"], prepped["b2"], prepped["w5"], prepped["b5"],
      prepped["w3"], prepped["b3"], prepped["w6"], prepped["b6"])

    if pb != B:
        q1 = q1[:B]
        q2 = q2[:B]
    return q1, q2


def init_params(key, state_dim, action_dim, hidden=HIDDEN):
    """PyTorch nn.Linear-style init: U[-1/sqrt(fan_in), 1/sqrt(fan_in)]."""
    in_dim = state_dim + action_dim
    dims = [
        ("w1", (in_dim, hidden)), ("b1", (1, hidden)),
        ("w2", (hidden, hidden)), ("b2", (1, hidden)),
        ("w3", (hidden, 1)),      ("b3", (1, 1)),
        ("w4", (in_dim, hidden)), ("b4", (1, hidden)),
        ("w5", (hidden, hidden)), ("b5", (1, hidden)),
        ("w6", (hidden, 1)),      ("b6", (1, 1)),
    ]
    params = {}
    for name, shape in dims:
        key, sub = jax.random.split(key)
        fan_in = shape[0] if name.startswith("w") else (
            in_dim if name in ("b1", "b4") else hidden)
        bound = 1.0 / jnp.sqrt(jnp.float32(fan_in))
        params[name] = jax.random.uniform(sub, shape, jnp.float32, -bound, bound)
    return params


def _reference(state, action, params):
    sa = jnp.concatenate([state, action], axis=1)
    h = jnp.maximum(sa @ params["w1"] + params["b1"], 0.0)
    h = jnp.maximum(h @ params["w2"] + params["b2"], 0.0)
    q1 = h @ params["w3"] + params["b3"]
    h = jnp.maximum(sa @ params["w4"] + params["b4"], 0.0)
    h = jnp.maximum(h @ params["w5"] + params["b5"], 0.0)
    q2 = h @ params["w6"] + params["b6"]
    return q1, q2


if __name__ == "__main__":
    key = jax.random.PRNGKey(0)
    pkey, k1, k2, k3, k4, k5, k6 = jax.random.split(key, 7)

    params = init_params(pkey, STATE_DIM, ACTION_DIM)
    prepped = prepare_params(params)

    def check(q, q_ref, name):
        # bf16 weights -> relaxed tolerance vs the f32 reference.
        assert q.shape == q_ref.shape, f"{name} shape mismatch"
        assert jnp.allclose(q, q_ref, atol=5e-2, rtol=5e-2), f"{name} mismatch"

    # 1) Small batch (single grid step, no padding).
    b = 8
    s = jax.random.normal(k1, (b, STATE_DIM), jnp.float32)
    a = jax.random.normal(k2, (b, ACTION_DIM), jnp.float32)
    q1, q2 = critic_forward(s, a, prepped)
    jax.block_until_ready((q1, q2))
    r1, r2 = _reference(s, a, params)
    check(q1, r1, "q1 small"); check(q2, r2, "q2 small")

    # 2) Ragged small batch (exercises the padding path).
    b = 13
    s = jax.random.normal(k3, (b, STATE_DIM), jnp.float32)
    a = jax.random.normal(k4, (b, ACTION_DIM), jnp.float32)
    q1, q2 = critic_forward(s, a, prepped)
    jax.block_until_ready((q1, q2))
    r1, r2 = _reference(s, a, params)
    check(q1, r1, "q1 ragged"); check(q2, r2, "q2 ragged")

    # 3) Larger batch (multi-step pipelined grid; tile chosen to avoid padding).
    b = 600
    s = jax.random.normal(k5, (b, STATE_DIM), jnp.float32)
    a = jax.random.normal(k6, (b, ACTION_DIM), jnp.float32)
    q1, q2 = critic_forward(s, a, prepped, block_b=256)
    jax.block_until_ready((q1, q2))
    r1, r2 = _reference(s, a, params)
    check(q1, r1, "q1 big"); check(q2, r2, "q2 big")

    print("KERNEL_OK")
</pallas_src>

<mosaic_0001>
module attributes {stable_mosaic.version = 11 : i64} {
  func.func @critic_kernel(%arg0: i32, %arg1: memref<8x11xf32, #tpu.memory_space<vmem>>, %arg2: memref<8x3xf32, #tpu.memory_space<vmem>>, %arg3: memref<11x512xbf16, #tpu.memory_space<vmem>>, %arg4: memref<3x512xbf16, #tpu.memory_space<vmem>>, %arg5: memref<1x512xf32, #tpu.memory_space<vmem>>, %arg6: memref<256x256xbf16, #tpu.memory_space<vmem>>, %arg7: memref<1x256xf32, #tpu.memory_space<vmem>>, %arg8: memref<256x256xbf16, #tpu.memory_space<vmem>>, %arg9: memref<1x256xf32, #tpu.memory_space<vmem>>, %arg10: memref<1x256xf32, #tpu.memory_space<vmem>>, %arg11: memref<1x1xf32, #tpu.memory_space<vmem>>, %arg12: memref<1x256xf32, #tpu.memory_space<vmem>>, %arg13: memref<1x1xf32, #tpu.memory_space<vmem>>, %arg14: memref<8x1xf32, #tpu.memory_space<vmem>>, %arg15: memref<8x1xf32, #tpu.memory_space<vmem>>) attributes {dimension_semantics = [#tpu.dimension_semantics<parallel>], iteration_bounds = array<i64: 1>, scalar_prefetch = 0 : i64, scratch_operands = 0 : i64, tpu.core_type = #tpu.core_type<tc>, window_params = [{transform_indices = @transform_0, window_bounds = array<i64: 8, 11>}, {transform_indices = @transform_1, window_bounds = array<i64: 8, 3>}, {pipeline_mode = #tpu.pipeline_mode<synchronous>, transform_indices = @transform_2, window_bounds = array<i64: 11, 512>}, {pipeline_mode = #tpu.pipeline_mode<synchronous>, transform_indices = @transform_3, window_bounds = array<i64: 3, 512>}, {pipeline_mode = #tpu.pipeline_mode<synchronous>, transform_indices = @transform_4, window_bounds = array<i64: 1, 512>}, {pipeline_mode = #tpu.pipeline_mode<synchronous>, transform_indices = @transform_5, window_bounds = array<i64: 256, 256>}, {pipeline_mode = #tpu.pipeline_mode<synchronous>, transform_indices = @transform_6, window_bounds = array<i64: 1, 256>}, {pipeline_mode = #tpu.pipeline_mode<synchronous>, transform_indices = @transform_7, window_bounds = array<i64: 256, 256>}, {pipeline_mode = #tpu.pipeline_mode<synchronous>, transform_indices = @transform_8, window_bounds = array<i64: 1, 256>}, {pipeline_mode = #tpu.pipeline_mode<synchronous>, transform_indices = @transform_9, window_bounds = array<i64: 1, 256>}, {pipeline_mode = #tpu.pipeline_mode<synchronous>, transform_indices = @transform_10, window_bounds = array<i64: 1, 1>}, {pipeline_mode = #tpu.pipeline_mode<synchronous>, transform_indices = @transform_11, window_bounds = array<i64: 1, 256>}, {pipeline_mode = #tpu.pipeline_mode<synchronous>, transform_indices = @transform_12, window_bounds = array<i64: 1, 1>}, {transform_indices = @transform_13, window_bounds = array<i64: 8, 1>}, {transform_indices = @transform_14, window_bounds = array<i64: 8, 1>}]} {
    %c0 = arith.constant 0 : index
    %c0_0 = arith.constant 0 : index
    %0 = vector.load %arg1[%c0, %c0_0] : memref<8x11xf32, #tpu.memory_space<vmem>>, vector<8x11xf32>
    %1 = arith.truncf %0 : vector<8x11xf32> to vector<8x11xbf16>
    %c0_1 = arith.constant 0 : index
    %c0_2 = arith.constant 0 : index
    %2 = vector.load %arg2[%c0_1, %c0_2] : memref<8x3xf32, #tpu.memory_space<vmem>>, vector<8x3xf32>
    %3 = arith.truncf %2 : vector<8x3xf32> to vector<8x3xbf16>
    %c0_3 = arith.constant 0 : index
    %c0_4 = arith.constant 0 : index
    %4 = vector.load %arg3[%c0_3, %c0_4] : memref<11x512xbf16, #tpu.memory_space<vmem>>, vector<11x512xbf16>
    %cst = arith.constant dense<0.000000e+00> : vector<8x512xf32>
    %5 = tpu.matmul %1, %4, %cst {dimension_numbers = #tpu.dot_dimension_numbers<[1], [0], [0], [1], [0, 0, 1, 1], [], []>} : vector<8x11xbf16>, vector<11x512xbf16>, vector<8x512xf32> -> vector<8x512xf32>
    %c0_5 = arith.constant 0 : index
    %c0_6 = arith.constant 0 : index
    %6 = vector.load %arg4[%c0_5, %c0_6] : memref<3x512xbf16, #tpu.memory_space<vmem>>, vector<3x512xbf16>
    %cst_7 = arith.constant dense<0.000000e+00> : vector<8x512xf32>
    %7 = tpu.matmul %3, %6, %cst_7 {dimension_numbers = #tpu.dot_dimension_numbers<[1], [0], [0], [1], [0, 0, 1, 1], [], []>} : vector<8x3xbf16>, vector<3x512xbf16>, vector<8x512xf32> -> vector<8x512xf32>
    %8 = arith.addf %5, %7 : vector<8x512xf32>
    %c0_8 = arith.constant 0 : index
    %c0_9 = arith.constant 0 : index
    %9 = vector.load %arg5[%c0_8, %c0_9] : memref<1x512xf32, #tpu.memory_space<vmem>>, vector<1x512xf32>
    %10 = vector.broadcast %9 : vector<1x512xf32> to vector<8x512xf32>
    %11 = arith.addf %8, %10 : vector<8x512xf32>
    %cst_10 = arith.constant 0.000000e+00 : f32
    %12 = vector.broadcast %cst_10 : f32 to vector<8x512xf32>
    %13 = arith.maximumf %11, %12 : vector<8x512xf32>
    %14 = vector.extract_strided_slice %13 {offsets = [0, 0], sizes = [8, 256], strides = [1, 1]} : vector<8x512xf32> to vector<8x256xf32>
    %15 = arith.truncf %14 : vector<8x256xf32> to vector<8x256xbf16>
    %16 = vector.extract_strided_slice %13 {offsets = [0, 256], sizes = [8, 256], strides = [1, 1]} : vector<8x512xf32> to vector<8x256xf32>
    %17 = arith.truncf %16 : vector<8x256xf32> to vector<8x256xbf16>
    %c0_11 = arith.constant 0 : index
    %c0_12 = arith.constant 0 : index
    %18 = vector.load %arg6[%c0_11, %c0_12] : memref<256x256xbf16, #tpu.memory_space<vmem>>, vector<256x256xbf16>
    %cst_13 = arith.constant dense<0.000000e+00> : vector<8x256xf32>
    %19 = tpu.matmul %15, %18, %cst_13 {dimension_numbers = #tpu.dot_dimension_numbers<[1], [0], [0], [1], [0, 0, 1, 1], [], []>} : vector<8x256xbf16>, vector<256x256xbf16>, vector<8x256xf32> -> vector<8x256xf32>
    %c0_14 = arith.constant 0 : index
    %c0_15 = arith.constant 0 : index
    %20 = vector.load %arg7[%c0_14, %c0_15] : memref<1x256xf32, #tpu.memory_space<vmem>>, vector<1x256xf32>
    %21 = vector.broadcast %20 : vector<1x256xf32> to vector<8x256xf32>
    %22 = arith.addf %19, %21 : vector<8x256xf32>
    %cst_16 = arith.constant 0.000000e+00 : f32
    %23 = vector.broadcast %cst_16 : f32 to vector<8x256xf32>
    %24 = arith.maximumf %22, %23 : vector<8x256xf32>
    %c0_17 = arith.constant 0 : index
    %c0_18 = arith.constant 0 : index
    %25 = vector.load %arg8[%c0_17, %c0_18] : memref<256x256xbf16, #tpu.memory_space<vmem>>, vector<256x256xbf16>
    %cst_19 = arith.constant dense<0.000000e+00> : vector<8x256xf32>
    %26 = tpu.matmul %17, %25, %cst_19 {dimension_numbers = #tpu.dot_dimension_numbers<[1], [0], [0], [1], [0, 0, 1, 1], [], []>} : vector<8x256xbf16>, vector<256x256xbf16>, vector<8x256xf32> -> vector<8x256xf32>
    %c0_20 = arith.constant 0 : index
    %c0_21 = arith.constant 0 : index
    %27 = vector.load %arg9[%c0_20, %c0_21] : memref<1x256xf32, #tpu.memory_space<vmem>>, vector<1x256xf32>
    %28 = vector.broadcast %27 : vector<1x256xf32> to vector<8x256xf32>
    %29 = arith.addf %26, %28 : vector<8x256xf32>
    %cst_22 = arith.constant 0.000000e+00 : f32
    %30 = vector.broadcast %cst_22 : f32 to vector<8x256xf32>
    %31 = arith.maximumf %29, %30 : vector<8x256xf32>
    %c0_23 = arith.constant 0 : index
    %c0_24 = arith.constant 0 : index
    %32 = vector.load %arg10[%c0_23, %c0_24] : memref<1x256xf32, #tpu.memory_space<vmem>>, vector<1x256xf32>
    %33 = vector.broadcast %32 : vector<1x256xf32> to vector<8x256xf32>
    %34 = arith.mulf %24, %33 : vector<8x256xf32>
    %cst_25 = arith.constant dense<0.000000e+00> : vector<8xf32>
    %35 = vector.multi_reduction <add>, %34, %cst_25 [1] : vector<8x256xf32> to vector<8xf32>
    %36 = vector.shape_cast %35 : vector<8xf32> to vector<8x1xf32>
    %c0_26 = arith.constant 0 : index
    %c0_27 = arith.constant 0 : index
    %37 = vector.load %arg11[%c0_26, %c0_27] : memref<1x1xf32, #tpu.memory_space<vmem>>, vector<1x1xf32>
    %38 = vector.broadcast %37 : vector<1x1xf32> to vector<8x1xf32>
    %39 = arith.addf %36, %38 : vector<8x1xf32>
    %c0_28 = arith.constant 0 : index
    %c0_29 = arith.constant 0 : index
    %40 = vector.load %arg12[%c0_28, %c0_29] : memref<1x256xf32, #tpu.memory_space<vmem>>, vector<1x256xf32>
    %41 = vector.broadcast %40 : vector<1x256xf32> to vector<8x256xf32>
    %42 = arith.mulf %31, %41 : vector<8x256xf32>
    %cst_30 = arith.constant dense<0.000000e+00> : vector<8xf32>
    %43 = vector.multi_reduction <add>, %42, %cst_30 [1] : vector<8x256xf32> to vector<8xf32>
    %44 = vector.shape_cast %43 : vector<8xf32> to vector<8x1xf32>
    %c0_31 = arith.constant 0 : index
    %c0_32 = arith.constant 0 : index
    %45 = vector.load %arg13[%c0_31, %c0_32] : memref<1x1xf32, #tpu.memory_space<vmem>>, vector<1x1xf32>
    %46 = vector.broadcast %45 : vector<1x1xf32> to vector<8x1xf32>
    %47 = arith.addf %44, %46 : vector<8x1xf32>
    %c0_33 = arith.constant 0 : index
    %c0_34 = arith.constant 0 : index
    %48 = vector.load %arg14[%c0_33, %c0_34] : memref<8x1xf32, #tpu.memory_space<vmem>>, vector<8x1xf32>
    tpu.vector_store %arg14[%c0_33, %c0_34], %39 {strides = array<i32>} : memref<8x1xf32, #tpu.memory_space<vmem>>, vector<8x1xf32>,
    %c0_35 = arith.constant 0 : index
    %c0_36 = arith.constant 0 : index
    %49 = vector.load %arg15[%c0_35, %c0_36] : memref<8x1xf32, #tpu.memory_space<vmem>>, vector<8x1xf32>
    tpu.vector_store %arg15[%c0_35, %c0_36], %47 {strides = array<i32>} : memref<8x1xf32, #tpu.memory_space<vmem>>, vector<8x1xf32>,
    return
  }
  func.func @transform_0(%arg0: i32) -> (i32, i32) {
    %c0_i32 = arith.constant 0 : i32
    %c0_i32_0 = arith.constant 0 : i32
    return %arg0, %c0_i32 : i32, i32
  }
  func.func @transform_1(%arg0: i32) -> (i32, i32) {
    %c0_i32 = arith.constant 0 : i32
    %c0_i32_0 = arith.constant 0 : i32
    return %arg0, %c0_i32 : i32, i32
  }
  func.func @transform_2(%arg0: i32) -> (i32, i32) {
    %c0_i32 = arith.constant 0 : i32
    %c0_i32_0 = arith.constant 0 : i32
    %c0_i32_1 = arith.constant 0 : i32
    return %c0_i32, %c0_i32_0 : i32, i32
  }
  func.func @transform_3(%arg0: i32) -> (i32, i32) {
    %c0_i32 = arith.constant 0 : i32
    %c0_i32_0 = arith.constant 0 : i32
    %c0_i32_1 = arith.constant 0 : i32
    return %c0_i32, %c0_i32_0 : i32, i32
  }
  func.func @transform_4(%arg0: i32) -> (i32, i32) {
    %c0_i32 = arith.constant 0 : i32
    %c0_i32_0 = arith.constant 0 : i32
    %c0_i32_1 = arith.constant 0 : i32
    return %c0_i32, %c0_i32_0 : i32, i32
  }
  func.func @transform_5(%arg0: i32) -> (i32, i32) {
    %c0_i32 = arith.constant 0 : i32
    %c0_i32_0 = arith.constant 0 : i32
    %c0_i32_1 = arith.constant 0 : i32
    return %c0_i32, %c0_i32_0 : i32, i32
  }
  func.func @transform_6(%arg0: i32) -> (i32, i32) {
    %c0_i32 = arith.constant 0 : i32
    %c0_i32_0 = arith.constant 0 : i32
    %c0_i32_1 = arith.constant 0 : i32
    return %c0_i32, %c0_i32_0 : i32, i32
  }
  func.func @transform_7(%arg0: i32) -> (i32, i32) {
    %c0_i32 = arith.constant 0 : i32
    %c0_i32_0 = arith.constant 0 : i32
    %c0_i32_1 = arith.constant 0 : i32
    return %c0_i32, %c0_i32_0 : i32, i32
  }
  func.func @transform_8(%arg0: i32) -> (i32, i32) {
    %c0_i32 = arith.constant 0 : i32
    %c0_i32_0 = arith.constant 0 : i32
    %c0_i32_1 = arith.constant 0 : i32
    return %c0_i32, %c0_i32_0 : i32, i32
  }
  func.func @transform_9(%arg0: i32) -> (i32, i32) {
    %c0_i32 = arith.constant 0 : i32
    %c0_i32_0 = arith.constant 0 : i32
    %c0_i32_1 = arith.constant 0 : i32
    return %c0_i32, %c0_i32_0 : i32, i32
  }
  func.func @transform_10(%arg0: i32) -> (i32, i32) {
    %c0_i32 = arith.constant 0 : i32
    %c0_i32_0 = arith.constant 0 : i32
    %c0_i32_1 = arith.constant 0 : i32
    return %c0_i32, %c0_i32_0 : i32, i32
  }
  func.func @transform_11(%arg0: i32) -> (i32, i32) {
    %c0_i32 = arith.constant 0 : i32
    %c0_i32_0 = arith.constant 0 : i32
    %c0_i32_1 = arith.constant 0 : i32
    return %c0_i32, %c0_i32_0 : i32, i32
  }
  func.func @transform_12(%arg0: i32) -> (i32, i32) {
    %c0_i32 = arith.constant 0 : i32
    %c0_i32_0 = arith.constant 0 : i32
    %c0_i32_1 = arith.constant 0 : i32
    return %c0_i32, %c0_i32_0 : i32, i32
  }
  func.func @transform_13(%arg0: i32) -> (i32, i32) {
    %c0_i32 = arith.constant 0 : i32
    %c0_i32_0 = arith.constant 0 : i32
    return %arg0, %c0_i32 : i32, i32
  }
  func.func @transform_14(%arg0: i32) -> (i32, i32) {
    %c0_i32 = arith.constant 0 : i32
    %c0_i32_0 = arith.constant 0 : i32
    return %arg0, %c0_i32 : i32, i32
  }
}

</mosaic_0001>

<bundles_post_ra>
// kernel: critic_forward.1
= control target key start
LH: loop header
LB: loop body
LE: loop exit
PB: predicated region body
PF: predicated region fallthrough
CT: control target
= control target key end

     0   :  { %s1488_s0 = inlined_call_operand.vmem [shape: f32[8,11], index: 0, kind: input, shape index: {}]   ;;  %s1489_s1 = inlined_call_operand.vmem [shape: f32[8,3], index: 1, kind: input, shape index: {}]   ;;  %s1490_s2 = inlined_call_operand.hbm [shape: bf16[11,512], index: 2, kind: input, shape index: {}]   ;;  %s1491_s3 = inlined_call_operand.vmem [shape: bf16[3,512], index: 3, kind: input, shape index: {}]   ;;  %s1492_s4 = inlined_call_operand.hbm [shape: f32[1,512], index: 4, kind: input, shape index: {}]   ;;  %s1493_s5 = inlined_call_operand.hbm [shape: bf16[256,256], index: 5, kind: input, shape index: {}]   ;;  %s1494_s6 = inlined_call_operand.vmem [shape: f32[1,256], index: 6, kind: input, shape index: {}]   ;;  %s1495_s7 = inlined_call_operand.hbm [shape: bf16[256,256], index: 7, kind: input, shape index: {}]   ;;  %s1496_s8 = inlined_call_operand.hbm [shape: f32[1,256], index: 8, kind: input, shape index: {}]   ;;  %s1497_s9 = inlined_call_operand.vmem [shape: f32[1,256], index: 9, kind: input, shape index: {}]   ;;  %s1498_s10 = inlined_call_operand.<no memory space> [shape: f32[1,1], index: 10, kind: input, shape index: {}]   ;;  %s1499_s11 = inlined_call_operand.vmem [shape: f32[1,256], index: 11, kind: input, shape index: {}]   ;;  %s1500_s13 = inlined_call_operand.vmem [shape: f32[8,1], index: 13, kind: output, shape index: {0}]   ;;  %s1501_s14 = inlined_call_operand.vmem [shape: f32[8,1], index: 14, kind: output, shape index: {1}]   ;;  %s1502_s12 = inlined_call_operand.<no memory space> [shape: f32[1,1], index: 12, kind: input, shape index: {}]  }
   0x1   :  { %v20_v0 = vstv %s1498_s10  ;;  %v22_v1 = vstv %s1502_s12 }
   0x2   :  { %21 = vst [vmem:[#allocation2] sm:$0x1] %v20_v0 }
   0x3   :  { %23 = vst [vmem:[#allocation3] sm:$0x1] %v22_v1 }
   0x4   :  { %24 = vsyncpa [#allocation5], 0 }
   0x5   :  { %25 = vsyncpa [#allocation7], 0  ;;  %s51_s19 = sshll.u32 %s1492_s4, 4  ;;  %s52_s19 = int_to_ptr.hbm [resolvable:$true] %s51_s19 }
   0x6   :  { %26 = vsyncpa [#allocation10], 0  ;;  %s1354_s20 = smov [#allocation6]   ;;  %s76_s23 = sshll.u32 %s1495_s7, 4  ;;  %s77_s23 = int_to_ptr.hbm [resolvable:$true] %s76_s23 }
   0x7   :  { %s53_s21 = sshll.u32 %s1354_s20, 4  ;;  %s1355_s12 = smov [#allocation9]   ;;  %s54_s21 = int_to_ptr.vmem [resolvable:$true] %s53_s21 }
   0x8   :  { %56 = dma.hbm_to_vmem [thread:$0]  %s52_s19, 64, %s54_s21, [#allocation7]  }
   0x9   :  { %s78_s24 = sshll.u32 %s1355_s12, 4  ;;  %s35_s27 = sshll.u32 %s1490_s2, 4  ;;  %s79_s24 = int_to_ptr.vmem [resolvable:$true] %s78_s24  ;;  %s36_s27 = int_to_ptr.hbm [resolvable:$true] %s35_s27 }
   0xa   :  { %s1356_s4 = smov 128   ;;  %s1357_s28 = smov 8  }
   0xb   :  { %84 = dma.hbm_to_vmem [thread:$0]  %s77_s23, 4096, %s79_s24, [#allocation10], %s1356_s4, %s1356_s4, %s1357_s28  }
   0xc   :  { %s1358_s29 = smov [#allocation4]   ;;  %s61_s17 = sshll.u32 %s1493_s5, 4  ;;  %s62_s17 = int_to_ptr.hbm [resolvable:$true] %s61_s17 }
   0xd   :  { %s37_s30 = sshll.u32 %s1358_s29, 4  ;;  %s1359_s7 = smov 256   ;;  %s38_s30 = int_to_ptr.vmem [resolvable:$true] %s37_s30 }
   0xe   :  { %s1360_s18 = smov 16   ;;  %s1361_s19 = smov [#allocation8]  }
   0xf   :  { %43 = dma.hbm_to_vmem [thread:$0]  %s36_s27, 512, %s38_s30, [#allocation5], %s1359_s7, %s1359_s7, %s1360_s18  }
  0x10   :  { %s63_s20 = sshll.u32 %s1361_s19, 4  ;;  %s90_s22 = sshll.u32 %s1496_s8, 4  ;;  %s64_s20 = int_to_ptr.vmem [resolvable:$true] %s63_s20  ;;  %s91_s22 = int_to_ptr.hbm [resolvable:$true] %s90_s22 }
  0x11   :  { %69 = dma.hbm_to_vmem [thread:$0]  %s62_s17, 4096, %s64_s20, [#allocation7], %s1356_s4, %s1356_s4, %s1357_s28  }
  0x12   :  { %s1362_s10 = smov [#allocation11]  }
  0x13   :  { %s92_s23 = sshll.u32 %s1362_s10, 4  ;;  %s93_s23 = int_to_ptr.vmem [resolvable:$true] %s92_s23 }
  0x14   :  { %95 = dma.hbm_to_vmem [thread:$0]  %s91_s22, 32, %s93_s23, [#allocation10]  }
  0x15   :  { %1348 = dma.done.wait [#allocation5], 512  }
  0x16   :  { %1349 = vsyncadd [#allocation5], 4294966784 }
  0x17   :  { %1350 = dma.done.wait [#allocation7], 4160  }
  0x18   :  { %1351 = vsyncadd [#allocation7], 4294963136 }
  0x19   :  { %1352 = dma.done.wait [#allocation10], 4128  }
  0x1a   :  { %1353 = vsyncadd [#allocation10], 4294963168  ;;  %v133_v2 = vld [vmem:[%s1491_s3] sm:$0xff]  ;;  %vm144_vm0 = vcmask 1040384   ;;  %vm228_vm1 = vcmask 1044480   ;;  %vm145_vm2 = vcmask 1041408  }
  0x1b   :  { %135 = vst [vmem:[#allocation1] ss:$4 sm:$0xff] %v133_v2  ;;  %v874_v3 = vld [vmem:[#allocation4] sm:$0xf]  ;;  %v1150_v4 = vld [vmem:[#allocation4 + $0xc] sm:$0x30] }
  0x1c   :  { %v1148_v5 = vld [vmem:[#allocation4 + $0x4] sm:$0xf]  ;;  %v876_v6 = vld [vmem:[#allocation4 + $0x10] sm:$0x30]  ;;  %v1363_v7 = vmov 65535   ;;  %vm229_vm3 = vcmask 1045504   ;;  %v875_v11 = vor.u32 %v1150_v4, %v874_v3 }
  0x1d   :  { %v146_v8 = vsel %vm144_vm0, 4294967295, %v1363_v7  ;;  %v230_v9 = vsel %vm228_vm1, 4294967295, %v1363_v7  ;;  %v882_v10 = vld [vmem:[#allocation4 + $0x8] sm:$0xf]  ;;  %v879_v12 = vor.u32 %v1148_v5, %v876_v6  ;;  %v1151_v13 = vld [vmem:[#allocation4 + $0x14] sm:$0x30] }
  0x1e   :  { %v1149_v14 = vld [vmem:[#allocation4 + $0xc] sm:$0xf]  ;;  %v884_v15 = vld [vmem:[#allocation4 + $0x18] sm:$0x30]  ;;  %v147_v16 = vsel %vm145_vm2, %v146_v8, 0  ;;  %v231_v17 = vsel %vm229_vm3, %v230_v9, 0  ;;  %v883_v21 = vor.u32 %v1151_v13, %v882_v10 }
  0x1f   :  { %v127_v18 = vld [vmem:[%s1489_s1] sm:$0xff]  ;;  %vm140_vm4 = vcmask 23552   ;;  %v887_v22 = vor.u32 %v1149_v14, %v884_v15  ;;  %v233_v29 = vand.u32 %v875_v11, %v231_v17  ;;  %v236_v30 = vand.u32 %v879_v12, %v231_v17  ;;  %v952_v37 = vld [vmem:[#allocation8 + $0x78] sm:$0xf0]  ;;  %v942_v44 = vld [vmem:[#allocation8 + $0x60] sm:$0xf] }
  0x20   :  { %v950_v23 = vld [vmem:[#allocation8 + $0x70] sm:$0xf]  ;;  %v1167_v24 = vld [vmem:[#allocation8 + $0x74] sm:$0xf0]  ;;  %v128_v33 = vpack.c.bf16 %v127_v18, %v127_v18  ;;  %v1166_v36 = vld [vmem:[#allocation8 + $0x74] sm:$0xf]  ;;  %v239_v40 = vand.u32 %v883_v21, %v231_v17 }
  0x21   :  { %v1014_v34 = vld [vmem:[#allocation8 + $0xf0] sm:$0xf]  ;;  %v1183_v35 = vld [vmem:[#allocation8 + $0xf4] sm:$0xf0]  ;;  %v1182_v38 = vld [vmem:[#allocation8 + $0xf4] sm:$0xf]  ;;  %v242_v41 = vand.u32 %v887_v22, %v231_v17  ;;  %v951_v42 = vor.u32 %v1167_v24, %v950_v23  ;;  %v955_v46 = vor.u32 %v1166_v36, %v952_v37 }
  0x22   :  { %v136_v19 = vld.sshfl [vmem:[#allocation1] sm:$0xff pattern:$0x73625140]  ;;  %v137_v20 = vld.sshfl [vmem:[#allocation1 + $0x8] sm:$0xff pattern:$0x73625140]  ;;  %v1015_v43 = vor.u32 %v1183_v35, %v1014_v34 }
  0x23   :  { %v148_v25 = vand.u32 %v147_v16, %v136_v19  ;;  %v150_v26 = vand.u32 %v147_v16, %v137_v20  ;;  %v138_v27 = vld.sshfl [vmem:[#allocation1 + $0x10] sm:$0xff pattern:$0x73625140]  ;;  %v139_v28 = vld.sshfl [vmem:[#allocation1 + $0x18] sm:$0xff pattern:$0x73625140] }
  0x24   :  { %v152_v31 = vand.u32 %v147_v16, %v138_v27  ;;  %v154_v32 = vand.u32 %v147_v16, %v139_v28  ;;  %v1016_v39 = vld [vmem:[#allocation8 + $0xf8] sm:$0xf0]  ;;  %v1165_v45 = vld [vmem:[#allocation8 + $0x64] sm:$0xf0]  ;;  %v1006_v48 = vld [vmem:[#allocation8 + $0xe0] sm:$0xf] }
  0x25   :  { %163 = vmatpush.bf16.msra.mxu0 %v148_v25  ;;  %176 = vmatpush.bf16.msra.mxu1 %v150_v26  ;;  %v1019_v47 = vor.u32 %v1182_v38, %v1016_v39  ;;  %v1181_v49 = vld [vmem:[#allocation8 + $0xe4] sm:$0xf0]  ;;  %v1164_v50 = vld [vmem:[#allocation8 + $0x64] sm:$0xf]  ;;  %v944_v51 = vld [vmem:[#allocation8 + $0x68] sm:$0xf0]  ;;  %v943_v55 = vor.u32 %v1165_v45, %v942_v44 }
  0x26   :  { %189 = vmatpush.bf16.msra.mxu2 %v152_v31  ;;  %202 = vmatpush.bf16.msra.mxu3 %v154_v32  ;;  %v1180_v52 = vld [vmem:[#allocation8 + $0xe4] sm:$0xf]  ;;  %v1008_v53 = vld [vmem:[#allocation8 + $0xe8] sm:$0xf0]  ;;  %v934_v54 = vld [vmem:[#allocation8 + $0x50] sm:$0xf]  ;;  %v1007_v56 = vor.u32 %v1181_v49, %v1006_v48  ;;  %v947_v60 = vor.u32 %v1164_v50, %v944_v51 }
  0x27   :  { %v1163_v57 = vld [vmem:[#allocation8 + $0x54] sm:$0xf0]  ;;  %v998_v58 = vld [vmem:[#allocation8 + $0xd0] sm:$0xf]  ;;  %v1011_v61 = vor.u32 %v1180_v52, %v1008_v53  ;;  %v1162_v62 = vld [vmem:[#allocation8 + $0x54] sm:$0xf] }
  0x28   :  { %868 = vmatmul.msk.bf16.vlgmr.msra.gmra.mxu0 %vm140_vm4, %v128_v33  ;;  %869 = vmatmul.msk.bf16.vlgmr.msra.gmra.mxu1 %vm140_vm4, %v128_v33  ;;  %v1179_v59 = vld [vmem:[#allocation8 + $0xd4] sm:$0xf0]  ;;  %v936_v63 = vld [vmem:[#allocation8 + $0x58] sm:$0xf0]  ;;  %v1178_v0 = vld [vmem:[#allocation8 + $0xd4] sm:$0xf]  ;;  %v935_v2 = vor.u32 %v1163_v57, %v934_v54 }
  0x29   :  { %251 = vmatpush.bf16.msrb.mxu0 %v233_v29  ;;  %264 = vmatpush.bf16.msrb.mxu1 %v236_v30  ;;  %v1000_v1 = vld [vmem:[#allocation8 + $0xd8] sm:$0xf0]  ;;  %v999_v3 = vor.u32 %v1179_v59, %v998_v58  ;;  %v926_v4 = vld [vmem:[#allocation8 + $0x40] sm:$0xf]  ;;  %v939_v5 = vor.u32 %v1162_v62, %v936_v63  ;;  %v1161_v7 = vld [vmem:[#allocation8 + $0x44] sm:$0xf0] }
  0x2a   :  { %870 = vmatmul.msk.bf16.vlgmr.msra.gmra.mxu2 %vm140_vm4, %v128_v33  ;;  %871 = vmatmul.msk.bf16.vlgmr.msra.gmra.mxu3 %vm140_vm4, %v128_v33  ;;  %v1003_v6 = vor.u32 %v1178_v0, %v1000_v1  ;;  %v990_v8 = vld [vmem:[#allocation8 + $0xc0] sm:$0xf]  ;;  %v1177_v9 = vld [vmem:[#allocation8 + $0xc4] sm:$0xf0]  ;;  %v125_v10 = vld [vmem:[%s1488_s0] sm:$0xff]  ;;  %v927_v13 = vor.u32 %v1161_v7, %v926_v4  ;;  %vm224_vm5 = vcmask 89088  }
  0x2b   :  { %277 = vmatpush.bf16.msrb.mxu2 %v239_v40  ;;  %290 = vmatpush.bf16.msrb.mxu3 %v242_v41  ;;  %v1160_v11 = vld [vmem:[#allocation8 + $0x44] sm:$0xf]  ;;  %v928_v12 = vld [vmem:[#allocation8 + $0x48] sm:$0xf0]  ;;  %v991_v14 = vor.u32 %v1177_v9, %v990_v8  ;;  %v918_v17 = vld [vmem:[#allocation8 + $0x30] sm:$0xf]  ;;  %v126_v18 = vpack.c.bf16 %v125_v10, %v125_v10 }
  0x2c   :  { %v1176_v15 = vld [vmem:[#allocation8 + $0xc4] sm:$0xf]  ;;  %v992_v16 = vld [vmem:[#allocation8 + $0xc8] sm:$0xf0]  ;;  %v1159_v19 = vld [vmem:[#allocation8 + $0x34] sm:$0xf0]  ;;  %v931_v22 = vor.u32 %v1160_v11, %v928_v12 }
  0x2d   :  { %516 = vmatpush.bf16.msra.mxu0 %v951_v42  ;;  %529 = vmatpush.bf16.msra.mxu1 %v1015_v43  ;;  %v982_v20 = vld [vmem:[#allocation8 + $0xb0] sm:$0xf]  ;;  %v1175_v21 = vld [vmem:[#allocation8 + $0xb4] sm:$0xf0]  ;;  %v995_v23 = vor.u32 %v1176_v15, %v992_v16  ;;  %v1158_v24 = vld [vmem:[#allocation8 + $0x34] sm:$0xf]  ;;  %v919_v25 = vor.u32 %v1159_v19, %v918_v17 }
  0x2e   :  { %v983_v26 = vor.u32 %v1175_v21, %v982_v20  ;;  %v920_v27 = vld [vmem:[#allocation8 + $0x38] sm:$0xf0]  ;;  %v1174_v28 = vld [vmem:[#allocation8 + $0xb4] sm:$0xf]  ;;  %v910_v32 = vld [vmem:[#allocation8 + $0x20] sm:$0xf] }
  0x2f   :  { %542 = vmatpush.bf16.msra.mxu2 %v955_v46  ;;  %555 = vmatpush.bf16.msra.mxu3 %v1019_v47  ;;  %v984_v29 = vld [vmem:[#allocation8 + $0xb8] sm:$0xf0]  ;;  %v923_v30 = vor.u32 %v1158_v24, %v920_v27  ;;  %v1157_v33 = vld [vmem:[#allocation8 + $0x24] sm:$0xf0]  ;;  %v974_v34 = vld [vmem:[#allocation8 + $0xa0] sm:$0xf] }
  0x30   :  { %v987_v31 = vor.u32 %v1174_v28, %v984_v29  ;;  %v911_v35 = vor.u32 %v1157_v33, %v910_v32  ;;  %v1173_v36 = vld [vmem:[#allocation8 + $0xa4] sm:$0xf0]  ;;  %v1156_v37 = vld [vmem:[#allocation8 + $0x24] sm:$0xf]  ;;  %v912_v38 = vld [vmem:[#allocation8 + $0x28] sm:$0xf0] }
  0x31   :  { %517 = vmatpush.bf16.msra.mxu0 %v943_v55  ;;  %530 = vmatpush.bf16.msra.mxu1 %v1007_v56  ;;  %v975_v39 = vor.u32 %v1173_v36, %v974_v34  ;;  %v915_v40 = vor.u32 %v1156_v37, %v912_v38  ;;  %v1172_v41 = vld [vmem:[#allocation8 + $0xa4] sm:$0xf]  ;;  %v976_v42 = vld [vmem:[#allocation8 + $0xa8] sm:$0xf0]  ;;  %v902_v43 = vld [vmem:[#allocation8 + $0x10] sm:$0xf] }
  0x32   :  { %v979_v44 = vor.u32 %v1172_v41, %v976_v42  ;;  %v1155_v45 = vld [vmem:[#allocation8 + $0x14] sm:$0xf0]  ;;  %v966_v46 = vld [vmem:[#allocation8 + $0x90] sm:$0xf]  ;;  %v1154_v50 = vld [vmem:[#allocation8 + $0x14] sm:$0xf] }
  0x33   :  { %543 = vmatpush.bf16.msra.mxu2 %v947_v60  ;;  %556 = vmatpush.bf16.msra.mxu3 %v1011_v61  ;;  %v1171_v47 = vld [vmem:[#allocation8 + $0x94] sm:$0xf0]  ;;  %v903_v48 = vor.u32 %v1155_v45, %v902_v43  ;;  %v904_v51 = vld [vmem:[#allocation8 + $0x18] sm:$0xf0]  ;;  %v1170_v52 = vld [vmem:[#allocation8 + $0x94] sm:$0xf] }
  0x34   :  { %v967_v49 = vor.u32 %v1171_v47, %v966_v46  ;;  %v907_v53 = vor.u32 %v1154_v50, %v904_v51  ;;  %v968_v54 = vld [vmem:[#allocation8 + $0x98] sm:$0xf0]  ;;  %v894_v56 = vld [vmem:[#allocation8] sm:$0xf]  ;;  %v1153_v57 = vld [vmem:[#allocation8 + $0x4] sm:$0xf0] }
  0x35   :  { %518 = vmatpush.bf16.msra.mxu0 %v935_v2  ;;  %531 = vmatpush.bf16.msra.mxu1 %v999_v3  ;;  %v971_v55 = vor.u32 %v1170_v52, %v968_v54  ;;  %v958_v58 = vld [vmem:[#allocation8 + $0x80] sm:$0xf]  ;;  %v895_v59 = vor.u32 %v1153_v57, %v894_v56  ;;  %v1169_v60 = vld [vmem:[#allocation8 + $0x84] sm:$0xf0]  ;;  %v1152_v61 = vld [vmem:[#allocation8 + $0x4] sm:$0xf] }
  0x36   :  { %v896_v62 = vld [vmem:[#allocation8 + $0x8] sm:$0xf0]  ;;  %v959_v63 = vor.u32 %v1169_v60, %v958_v58  ;;  %v1168_v1 = vld [vmem:[#allocation8 + $0x84] sm:$0xf]  ;;  %v1078_v3 = vld [vmem:[#allocation9 + $0x70] sm:$0xf] }
  0x37   :  { %544 = vmatpush.bf16.msra.mxu2 %v939_v5  ;;  %557 = vmatpush.bf16.msra.mxu3 %v1003_v6  ;;  %v899_v0 = vor.u32 %v1152_v61, %v896_v62  ;;  %v960_v2 = vld [vmem:[#allocation8 + $0x88] sm:$0xf0]  ;;  %v1199_v5 = vld [vmem:[#allocation9 + $0x74] sm:$0xf0]  ;;  %v1142_v6 = vld [vmem:[#allocation9 + $0xf0] sm:$0xf] }
  0x38   :  { %888 = vmatmul.msk.bf16.vlgmr.msrb.gmra.mxu0 %vm224_vm5, %v126_v18  ;;  %889 = vmatmul.msk.bf16.vlgmr.msrb.gmra.mxu1 %vm224_vm5, %v126_v18  ;;  %v963_v4 = vor.u32 %v1168_v1, %v960_v2  ;;  %v1215_v7 = vld [vmem:[#allocation9 + $0xf4] sm:$0xf0]  ;;  %v1079_v8 = vor.u32 %v1199_v5, %v1078_v3  ;;  %v1198_v10 = vld [vmem:[#allocation9 + $0x74] sm:$0xf]  ;;  %v1080_v11 = vld [vmem:[#allocation9 + $0x78] sm:$0xf0] }
  0x39   :  { %519 = vmatpush.bf16.msra.mxu0 %v927_v13  ;;  %532 = vmatpush.bf16.msra.mxu1 %v991_v14  ;;  %v1143_v9 = vor.u32 %v1215_v7, %v1142_v6  ;;  %v1214_v12 = vld [vmem:[#allocation9 + $0xf4] sm:$0xf]  ;;  %v1083_v13 = vor.u32 %v1198_v10, %v1080_v11  ;;  %v1144_v14 = vld [vmem:[#allocation9 + $0xf8] sm:$0xf0]  ;;  %v1070_v15 = vld [vmem:[#allocation9 + $0x60] sm:$0xf] }
  0x3a   :  { %890 = vmatmul.msk.bf16.vlgmr.msrb.gmra.mxu2 %vm224_vm5, %v126_v18  ;;  %891 = vmatmul.msk.bf16.vlgmr.msrb.gmra.mxu3 %vm224_vm5, %v126_v18  ;;  %v1197_v16 = vld [vmem:[#allocation9 + $0x64] sm:$0xf0]  ;;  %v1147_v17 = vor.u32 %v1214_v12, %v1144_v14  ;;  %v1134_v19 = vld [vmem:[#allocation9 + $0xe0] sm:$0xf]  ;;  %v1196_v21 = vld [vmem:[#allocation9 + $0x64] sm:$0xf] }
  0x3b   :  { %545 = vmatpush.bf16.msra.mxu2 %v931_v22  ;;  %558 = vmatpush.bf16.msra.mxu3 %v995_v23  ;;  %v1071_v18 = vor.u32 %v1197_v16, %v1070_v15  ;;  %v1213_v20 = vld [vmem:[#allocation9 + $0xe4] sm:$0xf0]  ;;  %v1072_v23 = vld [vmem:[#allocation9 + $0x68] sm:$0xf0]  ;;  %v1212_v24 = vld [vmem:[#allocation9 + $0xe4] sm:$0xf] }
  0x3c   :  { %v1135_v22 = vor.u32 %v1213_v20, %v1134_v19  ;;  %v1062_v28 = vld [vmem:[#allocation9 + $0x50] sm:$0xf]  ;;  %v1195_v29 = vld [vmem:[#allocation9 + $0x54] sm:$0xf0]  ;;  %v1194_v33 = vld [vmem:[#allocation9 + $0x54] sm:$0xf] }
  0x3d   :  { %520 = vmatpush.bf16.msra.mxu0 %v919_v25  ;;  %533 = vmatpush.bf16.msra.mxu1 %v983_v26  ;;  %v1136_v25 = vld [vmem:[#allocation9 + $0xe8] sm:$0xf0]  ;;  %v1075_v26 = vor.u32 %v1196_v21, %v1072_v23  ;;  %v1211_v32 = vld [vmem:[#allocation9 + $0xd4] sm:$0xf0]  ;;  %v1210_v36 = vld [vmem:[#allocation9 + $0xd4] sm:$0xf] }
  0x3e   :  { %v1139_v27 = vor.u32 %v1212_v24, %v1136_v25  ;;  %v1128_v38 = vld [vmem:[#allocation9 + $0xd8] sm:$0xf0]  ;;  %v1193_v41 = vld [vmem:[#allocation9 + $0x44] sm:$0xf0]  ;;  %v1118_v42 = vld [vmem:[#allocation9 + $0xc0] sm:$0xf] }
  0x3f   :  { %546 = vmatpush.bf16.msra.mxu2 %v923_v30  ;;  %559 = vmatpush.bf16.msra.mxu3 %v987_v31  ;;  %v1126_v30 = vld [vmem:[#allocation9 + $0xd0] sm:$0xf]  ;;  %v1063_v31 = vor.u32 %v1195_v29, %v1062_v28  ;;  %v1192_v45 = vld [vmem:[#allocation9 + $0x44] sm:$0xf]  ;;  %v1056_v46 = vld [vmem:[#allocation9 + $0x48] sm:$0xf0] }
  0x40   :  { %v1127_v34 = vor.u32 %v1211_v32, %v1126_v30  ;;  %v1120_v50 = vld [vmem:[#allocation9 + $0xc8] sm:$0xf0]  ;;  %v1046_v52 = vld [vmem:[#allocation9 + $0x30] sm:$0xf]  ;;  %v1207_v56 = vld [vmem:[#allocation9 + $0xb4] sm:$0xf0] }
  0x41   :  { %521 = vmatpush.bf16.msra.mxu0 %v911_v35  ;;  %534 = vmatpush.bf16.msra.mxu1 %v975_v39  ;;  %v1064_v35 = vld [vmem:[#allocation9 + $0x58] sm:$0xf0]  ;;  %v1131_v39 = vor.u32 %v1210_v36, %v1128_v38  ;;  %v1190_v57 = vld [vmem:[#allocation9 + $0x34] sm:$0xf]  ;;  %v1189_v1 = vld [vmem:[#allocation9 + $0x24] sm:$0xf0] }
  0x42   :  { %v1067_v37 = vor.u32 %v1194_v33, %v1064_v35  ;;  %v1206_v60 = vld [vmem:[#allocation9 + $0xb4] sm:$0xf]  ;;  %v1112_v61 = vld [vmem:[#allocation9 + $0xb8] sm:$0xf0]  ;;  %v1102_v2 = vld [vmem:[#allocation9 + $0xa0] sm:$0xf] }
  0x43   :  { %547 = vmatpush.bf16.msra.mxu2 %v915_v40  ;;  %560 = vmatpush.bf16.msra.mxu3 %v979_v44  ;;  %v1054_v40 = vld [vmem:[#allocation9 + $0x40] sm:$0xf]  ;;  %v1209_v44 = vld [vmem:[#allocation9 + $0xc4] sm:$0xf0]  ;;  %v1188_v5 = vld [vmem:[#allocation9 + $0x24] sm:$0xf] }
  0x44   :  { %v1055_v43 = vor.u32 %v1193_v41, %v1054_v40  ;;  %v1119_v47 = vor.u32 %v1209_v44, %v1118_v42  ;;  %v1040_v6 = vld [vmem:[#allocation9 + $0x28] sm:$0xf0]  ;;  %v1030_v12 = vld [vmem:[#allocation9 + $0x10] sm:$0xf]  ;;  %v1032_v19 = vld [vmem:[#allocation9 + $0x18] sm:$0xf0] }
  0x45   :  { %522 = vmatpush.bf16.msra.mxu0 %v903_v48  ;;  %535 = vmatpush.bf16.msra.mxu1 %v967_v49  ;;  %v1059_v48 = vor.u32 %v1192_v45, %v1056_v46  ;;  %v1208_v49 = vld [vmem:[#allocation9 + $0xc4] sm:$0xf]  ;;  %v1104_v10 = vld [vmem:[#allocation9 + $0xa8] sm:$0xf0]  ;;  %v1094_v14 = vld [vmem:[#allocation9 + $0x90] sm:$0xf] }
  0x46   :  { %v1123_v51 = vor.u32 %v1208_v49, %v1120_v50  ;;  %v1096_v23 = vld [vmem:[#allocation9 + $0x98] sm:$0xf0]  ;;  %v1022_v24 = vld [vmem:[#allocation9] sm:$0xf]  ;;  %v1201_v28 = vld [vmem:[#allocation9 + $0x84] sm:$0xf0] }
  0x47   :  { %548 = vmatpush.bf16.msra.mxu2 %v907_v53  ;;  %561 = vmatpush.bf16.msra.mxu3 %v971_v55  ;;  %v1191_v53 = vld [vmem:[#allocation9 + $0x34] sm:$0xf0]  ;;  %v1110_v55 = vld [vmem:[#allocation9 + $0xb0] sm:$0xf]  ;;  %v1184_v30 = vld [vmem:[#allocation9 + $0x4] sm:$0xf] }
  0x48   :  { %v1047_v54 = vor.u32 %v1191_v53, %v1046_v52  ;;  %v1111_v58 = vor.u32 %v1207_v56, %v1110_v55  ;;  %v1200_v32 = vld [vmem:[#allocation9 + $0x84] sm:$0xf]  ;;  %v1088_v33 = vld [vmem:[#allocation9 + $0x88] sm:$0xf0]  ;;  %v296_v42 = vld [vmem:[#allocation6] sm:$0xf] }
  0x49   :  { %523 = vmatpush.bf16.msra.mxu0 %v895_v59  ;;  %536 = vmatpush.bf16.msra.mxu1 %v959_v63  ;;  %v1048_v59 = vld [vmem:[#allocation9 + $0x38] sm:$0xf0]  ;;  %v1115_v63 = vor.u32 %v1206_v60, %v1112_v61  ;;  %v298_v45 = vperm.slane %v296_v42, 0  ;;  %v299_v46 = vperm.slane %v296_v42, 1  ;;  %vm854_vm6 = vcmask 7168  }
  0x4a   :  { %v1051_v62 = vor.u32 %v1190_v57, %v1048_v59 }
  0x4b   :  { %549 = vmatpush.bf16.msra.mxu2 %v899_v0  ;;  %562 = vmatpush.bf16.msra.mxu3 %v963_v4  ;;  %v1038_v0 = vld [vmem:[#allocation9 + $0x20] sm:$0xf]  ;;  %v1205_v4 = vld [vmem:[#allocation9 + $0xa4] sm:$0xf0] }
  0x4c   :  { %v1039_v3 = vor.u32 %v1189_v1, %v1038_v0  ;;  %v1103_v7 = vor.u32 %v1205_v4, %v1102_v2  ;;  %v301_v0 = vperm.slane %v296_v42, 3 }
  0x4d   :  { %768 = vmatpush.bf16.msrb.mxu0 %v1079_v8  ;;  %781 = vmatpush.bf16.msrb.mxu1 %v1143_v9  ;;  %v1043_v8 = vor.u32 %v1188_v5, %v1040_v6  ;;  %v1204_v9 = vld [vmem:[#allocation9 + $0xa4] sm:$0xf] }
  0x4e   :  { %v1107_v11 = vor.u32 %v1204_v9, %v1104_v10  ;;  %v350_v9 = vld [vmem:[%s1494_s6] sm:$0x3] }
  0x4f   :  { %794 = vmatpush.bf16.msrb.mxu2 %v1083_v13  ;;  %807 = vmatpush.bf16.msrb.mxu3 %v1147_v17  ;;  %v1187_v13 = vld [vmem:[#allocation9 + $0x14] sm:$0xf0]  ;;  %v352_v10 = vperm.slane %v350_v9, 0 }
  0x50   :  { %v1203_v17 = vld [vmem:[#allocation9 + $0x94] sm:$0xf0]  ;;  %v1031_v20 = vor.u32 %v1187_v13, %v1030_v12 }
  0x51   :  { %769 = vmatpush.bf16.msrb.mxu0 %v1071_v18  ;;  %782 = vmatpush.bf16.msrb.mxu1 %v1135_v22  ;;  %v1186_v18 = vld [vmem:[#allocation9 + $0x14] sm:$0xf]  ;;  %v1095_v21 = vor.u32 %v1203_v17, %v1094_v14  ;;  %v353_v14 = vperm.slane %v350_v9, 1 }
  0x52   :  { %v1202_v22 = vld [vmem:[#allocation9 + $0x94] sm:$0xf]  ;;  %v1035_v25 = vor.u32 %v1186_v18, %v1032_v19  ;;  %v822_v18 = vld [vmem:[%s1497_s9] sm:$0x3] }
  0x53   :  { %795 = vmatpush.bf16.msrb.mxu2 %v1075_v26  ;;  %808 = vmatpush.bf16.msrb.mxu3 %v1139_v27  ;;  %v1185_v26 = vld [vmem:[#allocation9 + $0x4] sm:$0xf0]  ;;  %v1086_v27 = vld [vmem:[#allocation9 + $0x80] sm:$0xf]  ;;  %v1099_v29 = vor.u32 %v1202_v22, %v1096_v23 }
  0x54   :  { %v1087_v35 = vor.u32 %v1201_v28, %v1086_v27 }
  0x55   :  { %770 = vmatpush.bf16.msrb.mxu0 %v1063_v31  ;;  %783 = vmatpush.bf16.msrb.mxu1 %v1127_v34  ;;  %v1024_v31 = vld [vmem:[#allocation9 + $0x8] sm:$0xf0]  ;;  %v1023_v34 = vor.u32 %v1185_v26, %v1022_v24  ;;  %v824_v24 = vperm.slane %v822_v18, 0  ;;  %v602_v26 = vld [vmem:[#allocation11] sm:$0x3] }
  0x56   :  { %v1027_v36 = vor.u32 %v1184_v30, %v1024_v31  ;;  %v604_v28 = vperm.slane %v602_v26, 0 }
  0x57   :  { %796 = vmatpush.bf16.msrb.mxu2 %v1067_v37  ;;  %809 = vmatpush.bf16.msrb.mxu3 %v1131_v39  ;;  %v1091_v39 = vor.u32 %v1200_v32, %v1088_v33 }
  0x59   :  { %771 = vmatpush.bf16.msrb.mxu0 %v1055_v43  ;;  %784 = vmatpush.bf16.msrb.mxu1 %v1119_v47 }
  0x5b   :  { %797 = vmatpush.bf16.msrb.mxu2 %v1059_v48  ;;  %810 = vmatpush.bf16.msrb.mxu3 %v1123_v51 }
  0x5d   :  { %772 = vmatpush.bf16.msrb.mxu0 %v1047_v54  ;;  %785 = vmatpush.bf16.msrb.mxu1 %v1111_v58 }
  0x5f   :  { %798 = vmatpush.bf16.msrb.mxu2 %v1051_v62  ;;  %811 = vmatpush.bf16.msrb.mxu3 %v1115_v63  ;;  %v300_v62 = vperm.slane %v296_v42, 2 }
  0x61   :  { %773 = vmatpush.bf16.msrb.mxu0 %v1039_v3  ;;  %786 = vmatpush.bf16.msrb.mxu1 %v1103_v7 }
  0x63   :  { %799 = vmatpush.bf16.msrb.mxu2 %v1043_v8  ;;  %812 = vmatpush.bf16.msrb.mxu3 %v1107_v11 }
  0x65   :  { %774 = vmatpush.bf16.msrb.mxu0 %v1031_v20  ;;  %787 = vmatpush.bf16.msrb.mxu1 %v1095_v21 }
  0x67   :  { %800 = vmatpush.bf16.msrb.mxu2 %v1035_v25  ;;  %813 = vmatpush.bf16.msrb.mxu3 %v1099_v29  ;;  %v825_v25 = vperm.slane %v822_v18, 1 }
  0x69   :  { %775 = vmatpush.bf16.msrb.mxu0 %v1023_v34  ;;  %788 = vmatpush.bf16.msrb.mxu1 %v1087_v35 }
  0x6b   :  { %801 = vmatpush.bf16.msrb.mxu2 %v1027_v36  ;;  %814 = vmatpush.bf16.msrb.mxu3 %v1091_v39  ;;  %v838_v39 = vld [vmem:[%s1499_s11] sm:$0x3] }
  0xa5   :  { %v165_v15 = vpop.f32.mrf.mxu0  ;;  %v178_v16 = vpop.f32.mrf.mxu1 }
  0xad   :  { %v191_v37 = vpop.f32.mrf.mxu2  ;;  %v204_v38 = vpop.f32.mrf.mxu3 }
  0xae   :  { %v167_v40 = vpop.f32.mrf.mxu0  ;;  %v180_v41 = vpop.f32.mrf.mxu1 }
  0xb5   :  { %v193_v43 = vpop.f32.mrf.mxu2  ;;  %v206_v44 = vpop.f32.mrf.mxu3 }
  0xb6   :  { %v253_v47 = vpop.f32.mrf.mxu0  ;;  %v266_v48 = vpop.f32.mrf.mxu1 }
  0xb7   :  { %v254_v49 = vadd.f32 %v253_v47, %v165_v15  ;;  %v267_v50 = vadd.f32 %v266_v48, %v178_v16  ;;  %v841_v48 = vperm.slane %v838_v39, 1 }
  0xb9   :  { %v306_v51 = vadd.f32 %v298_v45, %v254_v49  ;;  %v307_v52 = vadd.f32 %v299_v46, %v267_v50  ;;  %v840_v46 = vperm.slane %v838_v39, 0 }
  0xbb   :  { %v310_v53 = vmax.f32 %v306_v51, 0.0  ;;  %v311_v54 = vmax.f32 %v307_v52, 0.0 }
  0xbd   :  { %v314_v55 = vpack.c.bf16 %v310_v53, %v310_v53  ;;  %v315_v56 = vpack.c.bf16 %v311_v54, %v311_v54  ;;  %v279_v57 = vpop.f32.mrf.mxu2  ;;  %v292_v58 = vpop.f32.mrf.mxu3 }
  0xbe   :  { %v255_v59 = vpop.f32.mrf.mxu0  ;;  %v268_v60 = vpop.f32.mrf.mxu1  ;;  %v280_v61 = vadd.f32 %v279_v57, %v191_v37  ;;  %v293_v63 = vadd.f32 %v292_v58, %v204_v38  ;;  %v605_v37 = vperm.slane %v602_v26, 1  ;;  %v1227_v58 = vld [vmem:[#allocation3] ss:$0 sm:$0xff] }
  0xbf   :  { %524 = vmatmul.bf16.vlgmr.msra.gmra.mxu0 %v314_v55  ;;  %537 = vmatmul.bf16.vlgmr.msra.gmra.mxu1 %v315_v56 }
  0xc0   :  { %550 = vmatmul.bf16.vlgmr.msra.gmra.mxu2 %v314_v55  ;;  %563 = vmatmul.bf16.vlgmr.msra.gmra.mxu3 %v315_v56  ;;  %v308_v1 = vadd.f32 %v300_v62, %v280_v61  ;;  %v309_v2 = vadd.f32 %v301_v0, %v293_v63  ;;  %v1226_v55 = vld [vmem:[#allocation2] ss:$0 sm:$0xff] }
  0xc2   :  { %v312_v5 = vmax.f32 %v308_v1, 0.0  ;;  %v313_v6 = vmax.f32 %v309_v2, 0.0 }
  0xc4   :  { %v316_v7 = vpack.c.bf16 %v312_v5, %v312_v5  ;;  %v317_v8 = vpack.c.bf16 %v313_v6, %v313_v6 }
  0xc5   :  { %v281_v3 = vpop.f32.mrf.mxu2  ;;  %v294_v4 = vpop.f32.mrf.mxu3 }
  0xcf   :  { %776 = vmatmul.bf16.vlgmr.msrb.gmra.mxu0 %v316_v7  ;;  %789 = vmatmul.bf16.vlgmr.msrb.gmra.mxu1 %v317_v8 }
  0xd0   :  { %802 = vmatmul.bf16.vlgmr.msrb.gmra.mxu2 %v316_v7  ;;  %815 = vmatmul.bf16.vlgmr.msrb.gmra.mxu3 %v317_v8 }
 0x13c   :  { %v525_v11 = vpop.f32.mrf.mxu0  ;;  %v538_v12 = vpop.f32.mrf.mxu1 }
 0x13d   :  { %v526_v13 = vadd.f32 %v525_v11, %v352_v10 }
 0x13f   :  { %v539_v15 = vadd.f32 %v538_v12, %v526_v13 }
 0x141   :  { %v568_v22 = vmax.f32 %v539_v15, 0.0 }
 0x143   :  { %v551_v16 = vpop.f32.mrf.mxu2  ;;  %v564_v17 = vpop.f32.mrf.mxu3  ;;  %v828_v29 = vmul.f32 %v824_v24, %v568_v22 }
 0x144   :  { %v552_v19 = vadd.f32 %v551_v16, %v353_v14  ;;  %v527_v20 = vpop.f32.mrf.mxu0  ;;  %v540_v21 = vpop.f32.mrf.mxu1 }
 0x146   :  { %v565_v23 = vadd.f32 %v564_v17, %v552_v19 }
 0x148   :  { %v569_v27 = vmax.f32 %v565_v23, 0.0 }
 0x14a   :  { %v829_v30 = vmul.f32 %v825_v25, %v569_v27 }
 0x14b   :  { %v553_v31 = vpop.f32.mrf.mxu2  ;;  %v566_v32 = vpop.f32.mrf.mxu3 }
 0x14c   :  { %v777_v33 = vpop.f32.mrf.mxu0  ;;  %v790_v34 = vpop.f32.mrf.mxu1  ;;  %v830_v35 = vadd.f32 %v829_v30, %v828_v29 }
 0x14d   :  { %v778_v36 = vadd.f32 %v777_v33, %v604_v28 }
 0x14e   :  { %831 = vadd.xlane.f32.xlu0 %v830_v35 }
 0x14f   :  { %v791_v38 = vadd.f32 %v790_v34, %v778_v36 }
 0x151   :  { %v820_v45 = vmax.f32 %v791_v38, 0.0 }
 0x153   :  { %v803_v40 = vpop.f32.mrf.mxu2  ;;  %v816_v41 = vpop.f32.mrf.mxu3  ;;  %v844_v50 = vmul.f32 %v840_v46, %v820_v45 }
 0x154   :  { %v804_v42 = vadd.f32 %v803_v40, %v605_v37  ;;  %v779_v43 = vpop.f32.mrf.mxu0  ;;  %v792_v44 = vpop.f32.mrf.mxu1 }
 0x156   :  { %v817_v47 = vadd.f32 %v816_v41, %v804_v42 }
 0x158   :  { %v821_v49 = vmax.f32 %v817_v47, 0.0 }
 0x15a   :  { %v845_v51 = vmul.f32 %v841_v48, %v821_v49 }
 0x15b   :  { %v805_v52 = vpop.f32.mrf.mxu2  ;;  %v818_v53 = vpop.f32.mrf.mxu3 }
 0x15c   :  { %v846_v54 = vadd.f32 %v845_v51, %v844_v50 }
 0x15e   :  { %847 = vadd.xlane.f32.xlu0 %v846_v54 }
 0x1c1   :  { %v832_v56 = vpop.xlane.xlu0 %831 }
 0x1c2   :  { %v837_v57 = vadd.f32 %v1226_v55, %v832_v56 }
 0x1c4   :  { %855 = vst.msk [vmem:[%s1500_s13] sm:$0xff] %vm854_vm6, %v837_v57 }
 0x1d1   :  { %v848_v59 = vpop.xlane.xlu0 %847 }
 0x1d2   :  { %v853_v60 = vadd.f32 %v1227_v58, %v848_v59 }
 0x1d4   :  { %856 = vst.msk [vmem:[%s1501_s14] sm:$0xff] %vm854_vm6, %v853_v60 }
 0x1d5   :  { %865 = vsyncpa [#allocation5], 1 }
 0x1d6   :  { %866 = vsyncpa [#allocation7], 1 }
 0x1d7   :  { %867 = vsyncpa [#allocation10], 1 }

</bundles_post_ra>
